<compile_context>
chip_gen: v6e
topology: v6e:2x2x1
jax: 0.10.0
libtpu: 0.0.40
codegen_flags: <defaults>
</compile_context>

<pallas_src>
import functools

import jax
import jax.numpy as jnp
import numpy as np
from jax.experimental import pallas as pl
from jax.experimental.pallas import tpu as pltpu


def _tversky_tile_kernel(s_ref, l_ref, out_ref, *, n_classes, hw, do_softmax):
    """One (batch, spatial-tile) grid step.

    s_ref:   (C, TM, 128) scores for every class of this spatial tile.
    l_ref:   (TM, 128)    integer labels for this spatial tile.
    out_ref: (3, C, 128)  lane-dense partial sums: [tp, fp, fn] per class.
    """
    ti = pl.program_id(1)
    tm, lanes = l_ref.shape

    s = s_ref[...].astype(jnp.float32)          # (C, TM, 128)
    labels = l_ref[...].astype(jnp.int32)       # (TM, 128)

    # Validity mask over the flat spatial index: kills both the 128-lane tail
    # of the last row and the garbage rows of a partial Pallas block.
    row = jax.lax.broadcasted_iota(jnp.int32, (tm, lanes), 0)
    lane = jax.lax.broadcasted_iota(jnp.int32, (tm, lanes), 1)
    flat = (ti * tm + row) * lanes + lane
    valid = flat < hw                           # (TM, 128) bool

    if do_softmax:
        # All classes of this spatial tile are resident -> softmax fuses exactly.
        m = jnp.max(s, axis=0, keepdims=True)   # VPU slab max over classes
        e = jnp.exp(s - m)                      # EUP
        s = e / jnp.sum(e, axis=0, keepdims=True)

    # Select (not multiply) so NaN/Inf garbage in padded regions is killed.
    s = jnp.where(valid[None, :, :], s, 0.0)

    # One-hot masks for all classes at once.
    cls = jax.lax.broadcasted_iota(jnp.int32, (n_classes, 1, 1), 0)
    tmask = ((labels[None, :, :] == cls) & valid[None, :, :]).astype(jnp.float32)

    # tp = s*t, fp = (1-t)*s = s - s*t, fn = (1-s)*t = t - s*t (exact, t in {0,1}).
    tp_e = s * tmask
    out_ref[0] = jnp.sum(tp_e, axis=1)          # (C, 128) lane-dense partials
    out_ref[1] = jnp.sum(s - tp_e, axis=1)
    out_ref[2] = jnp.sum(tmask - tp_e, axis=1)


def _pick_block_rows(r, c, score_bytes, label_bytes, block_rows):
    """Rows (of 128 lanes) per spatial tile, capped by a conservative VMEM budget.

    Keeps the double-buffered input working set under ~12 MiB (safe for the
    v5e 16 MiB scoped-VMEM default, and far under v7x's 64 MiB physical VMEM).
    """
    budget = 12 * 1024 * 1024
    per_row = 128 * (c * score_bytes + label_bytes)
    cap = max(32, budget // (2 * per_row))
    tm = min(block_rows, r, cap)
    if tm < r:
        tm = max(32, (tm // 32) * 32)           # sublane / int8-tile aligned
    return tm


def tversky_loss(inputs, target, weight=None, alpha=0.7, softmax=False, block_rows=1024):
    """inputs: (N, C, H, W) scores/logits; target: (N, H, W) int class labels."""
    n, c, h, w = inputs.shape
    beta = 1.0 - alpha
    lanes = 128
    hw = h * w
    r = pl.cdiv(hw, lanes)
    hw_pad = r * lanes

    scores = inputs.reshape(n, c, hw)           # free, contiguous reshape (no transpose)
    labels = target.reshape(n, hw)
    # int8 labels (4x less label HBM traffic) whenever classes fit and every
    # label block stays (32k, 128)-aligned; otherwise fall back to int32.
    if c <= 127 and r % 32 == 0:
        labels = labels.astype(jnp.int8)
    else:
        labels = labels.astype(jnp.int32)

    if hw_pad != hw:
        # TODO(synk): a flat (N, C, HW) block layout would avoid this HBM copy;
        # only hit when H*W is not a multiple of 128 (the in-kernel flat-index
        # mask already makes the pad contents irrelevant).
        scores = jnp.pad(scores, ((0, 0), (0, 0), (0, hw_pad - hw)))
        labels = jnp.pad(labels, ((0, 0), (0, hw_pad - hw)))
    scores = scores.reshape(n, c, r, lanes)     # native dtype (e.g. bf16) kept
    labels = labels.reshape(n, r, lanes)

    tm = _pick_block_rows(r, c, scores.dtype.itemsize, labels.dtype.itemsize, block_rows)
    num_t = pl.cdiv(r, tm)

    kernel = functools.partial(
        _tversky_tile_kernel, n_classes=c, hw=hw, do_softmax=bool(softmax))

    # Every grid step writes its own lane-dense (3, C, 128) partial block, so
    # both grid axes are truly parallel (v7x's two TensorCores split the grid).
    parts = pl.pallas_call(
        kernel,
        out_shape=jax.ShapeDtypeStruct((n, num_t, 3, c, lanes), jnp.float32),
        grid=(n, num_t),
        in_specs=[
            pl.BlockSpec((None, c, tm, lanes), lambda ni, ti: (ni, 0, ti, 0)),   # scores
            pl.BlockSpec((None, tm, lanes), lambda ni, ti: (ni, ti, 0)),          # labels
        ],
        out_specs=pl.BlockSpec((None, None, 3, c, lanes),
                               lambda ni, ti: (ni, ti, 0, 0, 0)),
        compiler_params=pltpu.CompilerParams(
            dimension_semantics=("parallel", "parallel"),
        ),
    )(scores, labels)

    # Finalize in JAX glue: tiny reduction + Tversky formula + class weights.
    sums = jnp.sum(parts, axis=(0, 1, 4))       # (3, C) f32
    tp, fp, fn = sums[0], sums[1], sums[2]

    if weight is None:
        weight = [1.0] * c
    wvec = jnp.asarray(weight, dtype=jnp.float32)
    smooth = jnp.float32(1e-5)
    tversky = (tp + smooth) / (tp + alpha * fp + beta * fn + smooth)
    loss = jnp.sum((1.0 - tversky) * wvec) / c
    return loss


def _tversky_loss_ref(inputs, target, weight=None, alpha=0.7, softmax=False):
    """Pure-JAX reference mirroring the PyTorch module."""
    n, c, h, w = inputs.shape
    if softmax:
        inputs = jax.nn.softmax(inputs, axis=1)
    if weight is None:
        weight = [1.0] * c
    beta = 1.0 - alpha
    smooth = 1e-5
    one_hot = (target[:, None, :, :] == jnp.arange(c)[None, :, None, None]).astype(jnp.float32)
    loss = 0.0
    for i in range(c):
        s = inputs[:, i].astype(jnp.float32)
        t = one_hot[:, i]
        tp = jnp.sum(s * t)
        fp = jnp.sum((1.0 - t) * s)
        fn = jnp.sum((1.0 - s) * t)
        tversky = (tp + smooth) / (tp + alpha * fp + beta * fn + smooth)
        loss = loss + (1.0 - tversky) * weight[i]
    return loss / c


if __name__ == "__main__":
    key = jax.random.PRNGKey(0)
    k1, k2, k3, k4, k5, k6 = jax.random.split(key, 6)

    # Case 1: small standard shapes, fused softmax, default weights.
    N, C, H, W = 2, 4, 16, 16
    logits = jax.random.normal(k1, (N, C, H, W), dtype=jnp.float32)
    target = jax.random.randint(k2, (N, H, W), 0, C, dtype=jnp.int32)
    loss = jax.block_until_ready(tversky_loss(logits, target, alpha=0.7, softmax=True))
    ref = _tversky_loss_ref(logits, target, alpha=0.7, softmax=True)
    np.testing.assert_allclose(np.asarray(loss), np.asarray(ref), rtol=1e-5, atol=1e-5)

    # Case 2: H*W not a multiple of 128 (pad + in-kernel tail mask) + class weights.
    N2, C2, H2, W2 = 2, 3, 10, 10
    scores2 = jax.nn.sigmoid(jax.random.normal(k3, (N2, C2, H2, W2), dtype=jnp.float32))
    target2 = jax.random.randint(k4, (N2, H2, W2), 0, C2, dtype=jnp.int32)
    wgt = [0.5, 1.0, 2.0]
    loss2 = jax.block_until_ready(
        tversky_loss(scores2, target2, weight=wgt, alpha=0.7, softmax=False))
    ref2 = _tversky_loss_ref(scores2, target2, weight=wgt, alpha=0.7, softmax=False)
    np.testing.assert_allclose(np.asarray(loss2), np.asarray(ref2), rtol=1e-5, atol=1e-5)

    # Case 3: larger spatial extent -> int8 labels, multiple spatial tiles with a
    # partial last tile, fused softmax, both grid axes parallel.
    N3, C3, H3, W3 = 2, 5, 128, 96
    logits3 = jax.random.normal(k5, (N3, C3, H3, W3), dtype=jnp.float32)
    target3 = jax.random.randint(k6, (N3, H3, W3), 0, C3, dtype=jnp.int32)
    loss3 = jax.block_until_ready(
        tversky_loss(logits3, target3, alpha=0.6, softmax=True, block_rows=64))
    ref3 = _tversky_loss_ref(logits3, target3, alpha=0.6, softmax=True)
    np.testing.assert_allclose(np.asarray(loss3), np.asarray(ref3), rtol=1e-5, atol=1e-5)

    print("KERNEL_OK")
</pallas_src>

<mosaic_0001>
module attributes {stable_mosaic.version = 11 : i64} {
  func.func @_tversky_tile_kernel(%arg0: i32, %arg1: i32, %arg2: memref<1x4x2x128xf32, #tpu.memory_space<vmem>>, %arg3: memref<1x2x128xi32, #tpu.memory_space<vmem>>, %arg4: memref<1x1x3x4x128xf32, #tpu.memory_space<vmem>>) attributes {dimension_semantics = [#tpu.dimension_semantics<parallel>, #tpu.dimension_semantics<parallel>], iteration_bounds = array<i64: 2, 1>, scalar_prefetch = 0 : i64, scratch_operands = 0 : i64, tpu.core_type = #tpu.core_type<tc>, window_params = [{transform_indices = @transform_0, window_bounds = array<i64: 1, 4, 2, 128>}, {transform_indices = @transform_1, window_bounds = array<i64: 1, 2, 128>}, {transform_indices = @transform_2, window_bounds = array<i64: 1, 1, 3, 4, 128>}]} {
    %c0 = arith.constant 0 : index
    %c0_0 = arith.constant 0 : index
    %c0_1 = arith.constant 0 : index
    %c0_2 = arith.constant 0 : index
    %0 = vector.load %arg2[%c0, %c0_0, %c0_1, %c0_2] : memref<1x4x2x128xf32, #tpu.memory_space<vmem>>, vector<1x4x2x128xf32>
    %1 = vector.shape_cast %0 : vector<1x4x2x128xf32> to vector<4x2x128xf32>
    %c0_3 = arith.constant 0 : index
    %c0_4 = arith.constant 0 : index
    %c0_5 = arith.constant 0 : index
    %2 = vector.load %arg3[%c0_3, %c0_4, %c0_5] : memref<1x2x128xi32, #tpu.memory_space<vmem>>, vector<1x2x128xi32>
    %3 = vector.shape_cast %2 : vector<1x2x128xi32> to vector<2x128xi32>
    %4 = tpu.iota {dimensions = array<i32: 0>} : vector<2x128xi32>
    %5 = tpu.iota {dimensions = array<i32: 1>} : vector<2x128xi32>
    %c2_i32 = arith.constant 2 : i32
    %6 = arith.muli %arg1, %c2_i32 : i32
    %7 = vector.broadcast %6 : i32 to vector<2x128xi32>
    %8 = arith.addi %7, %4 : vector<2x128xi32>
    %c128_i32 = arith.constant 128 : i32
    %9 = vector.broadcast %c128_i32 : i32 to vector<2x128xi32>
    %10 = arith.muli %8, %9 : vector<2x128xi32>
    %11 = arith.addi %10, %5 : vector<2x128xi32>
    %c256_i32 = arith.constant 256 : i32
    %12 = vector.broadcast %c256_i32 : i32 to vector<2x128xi32>
    %13 = arith.cmpi slt, %11, %12 : vector<2x128xi32>
    %cst = arith.constant dense<0xFF800000> : vector<2x128xf32>
    %14 = vector.multi_reduction <maximumf>, %1, %cst [0] : vector<4x2x128xf32> to vector<2x128xf32>
    %15 = vector.shape_cast %14 : vector<2x128xf32> to vector<1x2x128xf32>
    %16 = vector.broadcast %15 : vector<1x2x128xf32> to vector<4x2x128xf32>
    %17 = arith.subf %1, %16 : vector<4x2x128xf32>
    %18 = math.exp %17 : vector<4x2x128xf32>
    %cst_6 = arith.constant dense<0.000000e+00> : vector<2x128xf32>
    %19 = vector.multi_reduction <add>, %18, %cst_6 [0] : vector<4x2x128xf32> to vector<2x128xf32>
    %20 = vector.shape_cast %19 : vector<2x128xf32> to vector<1x2x128xf32>
    %21 = vector.broadcast %20 : vector<1x2x128xf32> to vector<4x2x128xf32>
    %22 = arith.divf %18, %21 : vector<4x2x128xf32>
    %23 = vector.shape_cast %13 : vector<2x128xi1> to vector<1x2x128xi1>
    %cst_7 = arith.constant 0.000000e+00 : f32
    %24 = vector.shape_cast %23 : vector<1x2x128xi1> to vector<1x2x128xi1>
    %25 = vector.broadcast %24 : vector<1x2x128xi1> to vector<4x2x128xi1>
    %26 = vector.broadcast %cst_7 : f32 to vector<4x2x128xf32>
    %27 = arith.select %25, %22, %26 : vector<4x2x128xi1>, vector<4x2x128xf32>
    %28 = tpu.iota {dimensions = array<i32: 0>} : vector<4x1x1xi32>
    %29 = vector.shape_cast %3 : vector<2x128xi32> to vector<1x2x128xi32>
    %30 = vector.broadcast %29 : vector<1x2x128xi32> to vector<4x2x128xi32>
    %31 = vector.broadcast %28 : vector<4x1x1xi32> to vector<4x2x128xi32>
    %32 = arith.cmpi eq, %30, %31 : vector<4x2x128xi32>
    %33 = vector.shape_cast %13 : vector<2x128xi1> to vector<1x2x128xi1>
    %34 = vector.broadcast %33 : vector<1x2x128xi1> to vector<4x2x128xi1>
    %35 = arith.andi %32, %34 : vector<4x2x128xi1>
    %36 = arith.extui %35 : vector<4x2x128xi1> to vector<4x2x128xi32>
    %37 = arith.sitofp %36 : vector<4x2x128xi32> to vector<4x2x128xf32>
    %38 = arith.mulf %27, %37 : vector<4x2x128xf32>
    %cst_8 = arith.constant dense<0.000000e+00> : vector<4x128xf32>
    %39 = vector.multi_reduction <add>, %38, %cst_8 [1] : vector<4x2x128xf32> to vector<4x128xf32>
    %c0_9 = arith.constant 0 : index
    %c0_10 = arith.constant 0 : index
    %c0_11 = arith.constant 0 : index
    %c0_12 = arith.constant 0 : index
    %c0_13 = arith.constant 0 : index
    %40 = vector.load %arg4[%c0_9, %c0_10, %c0_11, %c0_12, %c0_13] : memref<1x1x3x4x128xf32, #tpu.memory_space<vmem>>, vector<1x1x1x4x128xf32>
    %41 = vector.shape_cast %40 : vector<1x1x1x4x128xf32> to vector<4x128xf32>
    %42 = vector.shape_cast %39 : vector<4x128xf32> to vector<1x1x1x4x128xf32>
    tpu.vector_store %arg4[%c0_9, %c0_10, %c0_11, %c0_12, %c0_13], %42 {strides = array<i32>} : memref<1x1x3x4x128xf32, #tpu.memory_space<vmem>>, vector<1x1x1x4x128xf32>,
    %43 = arith.subf %27, %38 : vector<4x2x128xf32>
    %cst_14 = arith.constant dense<0.000000e+00> : vector<4x128xf32>
    %44 = vector.multi_reduction <add>, %43, %cst_14 [1] : vector<4x2x128xf32> to vector<4x128xf32>
    %c0_15 = arith.constant 0 : index
    %c0_16 = arith.constant 0 : index
    %c1 = arith.constant 1 : index
    %c0_17 = arith.constant 0 : index
    %c0_18 = arith.constant 0 : index
    %45 = vector.load %arg4[%c0_15, %c0_16, %c1, %c0_17, %c0_18] : memref<1x1x3x4x128xf32, #tpu.memory_space<vmem>>, vector<1x1x1x4x128xf32>
    %46 = vector.shape_cast %45 : vector<1x1x1x4x128xf32> to vector<4x128xf32>
    %47 = vector.shape_cast %44 : vector<4x128xf32> to vector<1x1x1x4x128xf32>
    tpu.vector_store %arg4[%c0_15, %c0_16, %c1, %c0_17, %c0_18], %47 {strides = array<i32>} : memref<1x1x3x4x128xf32, #tpu.memory_space<vmem>>, vector<1x1x1x4x128xf32>,
    %48 = arith.subf %37, %38 : vector<4x2x128xf32>
    %cst_19 = arith.constant dense<0.000000e+00> : vector<4x128xf32>
    %49 = vector.multi_reduction <add>, %48, %cst_19 [1] : vector<4x2x128xf32> to vector<4x128xf32>
    %c0_20 = arith.constant 0 : index
    %c0_21 = arith.constant 0 : index
    %c2 = arith.constant 2 : index
    %c0_22 = arith.constant 0 : index
    %c0_23 = arith.constant 0 : index
    %50 = vector.load %arg4[%c0_20, %c0_21, %c2, %c0_22, %c0_23] : memref<1x1x3x4x128xf32, #tpu.memory_space<vmem>>, vector<1x1x1x4x128xf32>
    %51 = vector.shape_cast %50 : vector<1x1x1x4x128xf32> to vector<4x128xf32>
    %52 = vector.shape_cast %49 : vector<4x128xf32> to vector<1x1x1x4x128xf32>
    tpu.vector_store %arg4[%c0_20, %c0_21, %c2, %c0_22, %c0_23], %52 {strides = array<i32>} : memref<1x1x3x4x128xf32, #tpu.memory_space<vmem>>, vector<1x1x1x4x128xf32>,
    return
  }
  func.func @transform_0(%arg0: i32, %arg1: i32) -> (i32, i32, i32, i32) {
    %c0_i32 = arith.constant 0 : i32
    %c0_i32_0 = arith.constant 0 : i32
    %c0_i32_1 = arith.constant 0 : i32
    return %arg0, %c0_i32, %arg1, %c0_i32_0 : i32, i32, i32, i32
  }
  func.func @transform_1(%arg0: i32, %arg1: i32) -> (i32, i32, i32) {
    %c0_i32 = arith.constant 0 : i32
    %c0_i32_0 = arith.constant 0 : i32
    return %arg0, %arg1, %c0_i32 : i32, i32, i32
  }
  func.func @transform_2(%arg0: i32, %arg1: i32) -> (i32, i32, i32, i32, i32) {
    %c0_i32 = arith.constant 0 : i32
    %c0_i32_0 = arith.constant 0 : i32
    %c0_i32_1 = arith.constant 0 : i32
    %c0_i32_2 = arith.constant 0 : i32
    return %arg0, %arg1, %c0_i32, %c0_i32_0, %c0_i32_1 : i32, i32, i32, i32, i32
  }
}

</mosaic_0001>

<bundles_post_ra>
// kernel: tpu_custom_call.1
= control target key start
LH: loop header
LB: loop body
LE: loop exit
PB: predicated region body
PF: predicated region fallthrough
CT: control target
= control target key end

     0   :  { %7 = vsyncpa [#allocation3], 0  ;;  %s1072_s0 = inlined_call_operand.hbm [shape: f32[2,4,2,128], index: 0, kind: input, shape index: {}]   ;;  %s1073_s1 = inlined_call_operand.hbm [shape: s32[2,2,128], index: 1, kind: input, shape index: {}]   ;;  %s1074_s2 = inlined_call_operand.hbm [shape: f32[2,1,3,4,128], index: 2, kind: output, shape index: {}]  }
   0x1   :  { %9 = vsyncpa [#allocation3 + $0x1], 0 }
   0x2   :  { %10 = vsyncpa [#allocation6], 0 }
   0x3   :  { %12 = vsyncpa [#allocation6 + $0x1], 0 }
   0x4   :  { %13 = vsyncpa [#allocation4], 0 }
   0x5   :  { %15 = vsyncpa [#allocation4 + $0x1], 0  ;;  %s813_s9 = smov 0   ;;  %s815_s10 = smov 0  }
   0x6   :  { %s817_s11 = smov 0   ;;  %s819_s12 = smov 0  }
   0x7   :  { %s821_s13 = smov 0   ;;  %s823_s14 = smov 0  }
   0x8 LB: > { %s542_s15 = sadd.s32 4294967295, %s788_s14   ;;  %s543_s16 = sadd.s32 4294967294, %s788_s14   ;;  %s788_s14 = sphi %s823_s14, %s21_s14   ;;  %s784_s13 = sphi %s821_s13, %s1085_s13   ;;  %s780_s12 = sphi %s819_s12, %s1084_s12   ;;  %s776_s11 = sphi %s817_s11, %s1083_s11   ;;  %s772_s10 = sphi %s815_s10, %s1082_s10   ;;  %s768_s9 = sphi %s813_s9, %s1081_s9  }
   0x9   : > { %s33_s17 = sadd.s32 1, %s784_s13  ;;  %s42_s18 = sadd.s32 1, %s776_s11 }
   0xa   : > { %p35_p0 = scmp.ge.s32.totalorder %s33_s17, 2  ;;  %p49_p1 = scmp.ne.s32.totalorder %s776_s11, %s772_s10 }
   0xb   : > { %p50_p2 = scmp.eq.s32.totalorder %s788_s14, 0  ;;  %p55_p3 = scmp.ne.s32.totalorder %s772_s10, %s768_s9 }
   0xc   : > { %s1087_s17 = smov (%p35_p0, %s33_s17), 0  ;;  %p56_p5 = scmp.eq.s32.totalorder %s542_s15, 0 }
   0xd   : > { %p854_p4 = por %p50_p2, %p49_p1  ;;  %s37_s20 = ssub.s32 %s784_s13, %s1087_s17 }
   0xe   : > { %p109_p6 = scmp.eq.s32.totalorder %s542_s15, 1  ;;  %p40_p7 = scmp.eq.s32.totalorder %s37_s20, 0 }
   0xf   : > { %p860_p8 = por %p56_p5, %p55_p3  ;;  %p115_p10 = scmp.eq.s32.totalorder %s543_s16, 1 }
  0x10   : > { %p864_p9 = por %p109_p6, %p49_p1  ;;  %p545_p12 = scmp.ge.s32.totalorder %s788_s14, 2 }
  0x11   : > { %s869_s23 = scalar_select %p40_p7, %s776_s11, %s42_s18  }
  0x12   : > { %p871_p11 = por %p115_p10, %p55_p3  ;;  %p583_p13 = scmp.lt.s32.totalorder %s788_s14, 2 }
  0x13   : > { %s878_s25 = sand.u32 1, %s776_s11   ;;  %s563_s27 = sshll.u32 %s784_s13, 7 }
  0x14   : > { %s546_s26 = sshll.u32 %s878_s25, 3  ;;  %s146_s30 = scalar_lea.hbm %s1072_s0, %s563_s27 }
  0x15   : > { %s139_s3 = scalar_lea.vmem [#allocation2], %s546_s26  ;;  %p887_p0 = pnand %p583_p13, %p854_p4 }
  0x16   : > { %s147_s4 = sshll.u32 %s139_s3, 4  ;;  %p551_p1 = scmp.ge.s32.totalorder %s788_s14, 1  ;;  %s148_s4 = int_to_ptr.vmem [resolvable:$true] %s147_s4 }
  0x17   : > { %s136_s6 = scalar_lea.sflag [#allocation3], %s878_s25  ;;  %p650_p2 = pneg %p887_p0 }
  0x18   : > { %s661_s7 = scalar_lea.vmem %s148_s4, 128  ;;  %s790_s8 = smov [#allocation2]  }
  0x19   : > { %p662_p3 = scmp.ne.s32.totalorder %s148_s4, %s661_s7  ;;  %s666_s15 = sshll.u32 %s790_s8, 4  ;;  %s667_s15 = int_to_ptr.vmem [resolvable:$false] %s666_s15 }
  0x1a   : > { %s668_s16 = scalar_lea.vmem %s667_s15, 256  ;;  %p669_p4 = scmp.lt.s32.totalorder %s148_s4, %s667_s15 }
  0x1b   : > { %p664_p5 = pnand %p662_p3, %p650_p2  ;;  %p670_p7 = scmp.lt.s32.totalorder %s668_s16, %s661_s7 }
  0x1d   : > { %p665_p6 = pneg %p664_p5  ;;  %p671_p10 = por %p670_p7, %p669_p4 }
  0x1f   : > { %p672_p13 = pnand %p671_p10, %p665_p6 }
  0x21   : > { %675 = shalt.err (!%p672_p13)
}
  0x22   : > { %s791_s18 = smov 32   ;;  %s792_s19 = smov 2  }
  0x23   : > { %575 = dma.hbm_to_vmem [thread:$0]  (!%p887_p0), %s146_s30, 128, %s148_s4, %s136_s6, %s791_s18, %s791_s18, %s792_s19  }
  0x24   : > { %p174_p3 = scmp.lt.s32.totalorder %s788_s14, 3  ;;  %s549_s20 = sshll.u32 %s878_s25, 1 }
  0x25   : > { %s550_s26 = sshll.u32 %s784_s13, 5  ;;  %s161_s7 = scalar_lea.vmem [#allocation5], %s549_s20 }
  0x26   : > { %p905_p5 = pnand %p551_p1, %p174_p3  ;;  %s167_s3 = scalar_lea.hbm %s1073_s1, %s550_s26 }
  0x27   : > { %s169_s8 = sshll.u32 %s161_s7, 4  ;;  %s158_s15 = scalar_lea.sflag [#allocation6], %s878_s25  ;;  %s170_s8 = int_to_ptr.vmem [resolvable:$true] %s169_s8 }
  0x28   : > { %s689_s16 = scalar_lea.vmem %s170_s8, 32  ;;  %s793_s30 = smov [#allocation5]  }
  0x29   : > { %p690_p6 = scmp.ne.s32.totalorder %s170_s8, %s689_s16  ;;  %s694_s4 = sshll.u32 %s793_s30, 4  ;;  %s695_s4 = int_to_ptr.vmem [resolvable:$false] %s694_s4 }
  0x2a   : > { %s696_s6 = scalar_lea.vmem %s695_s4, 64  ;;  %p697_p1 = scmp.lt.s32.totalorder %s170_s8, %s695_s4 }
  0x2b   : > { %p692_p4 = pnand %p690_p6, %p650_p2  ;;  %p698_p10 = scmp.lt.s32.totalorder %s696_s6, %s689_s16 }
  0x2d   : > { %p693_p7 = pneg %p692_p4  ;;  %p699_p13 = por %p698_p10, %p697_p1 }
  0x2f   : > { %p700_p3 = pnand %p699_p13, %p693_p7 }
  0x31   : > { %703 = shalt.err (!%p700_p3)
}
  0x32   : > { %578 = dma.hbm_to_vmem [thread:$0]  (!%p887_p0), %s167_s3, 32, %s170_s8, %s158_s15  }
  0x33   : > { %178 = sbr.rel (%p905_p5) target bundleno = 159 (0x9f), region = 28  ;;  %s921_s25 = sand.u32 (!%p905_p5), 1, %s772_s10  }
  0x34   : > { %s552_s18 = sshll.u32 (!%p905_p5), %s921_s25, 3  ;;  %s181_s19 = scalar_lea.sflag (!%p905_p5), [#allocation3], %s921_s25 }
  0x35   : > { %s184_s20 = scalar_lea.vmem (!%p905_p5), [#allocation2], %s552_s18 }
  0x38   : > { %755 = dma.done.wait (%p860_p8), %s181_s19, 128  }
  0x39   : > { %757 = vsyncadd (%p860_p8), %s181_s19, 4294967168  ;;  %s553_s5 = sshll.u32 %s921_s25, 1  ;;  %s190_s26 = scalar_lea.sflag [#allocation6], %s921_s25 }
  0x3a   : > { %s931_s27 = scalar_lea.vmem [#allocation5], %s553_s5 }
  0x3b   : > { %759 = dma.done.wait (%p860_p8), %s190_s26, 32  }
  0x3c   : > { %761 = vsyncadd (%p860_p8), %s190_s26, 4294967264  ;;  %vm234_vm0 = vcmask 1041408   ;;  %v219_v0 = vld [vmem:[%s184_s20] sm:$0x3]  ;;  %v220_v1 = vld [vmem:[%s184_s20 + $0x2] sm:$0x3]  ;;  %v224_v19 = vlaneseq }
  0x3d   : > { %v221_v2 = vld [vmem:[%s184_s20 + $0x4] sm:$0x3]  ;;  %v222_v3 = vld [vmem:[%s184_s20 + $0x6] sm:$0x3]  ;;  %v235_v4 = vsel %vm234_vm0, %v219_v0, -inf  ;;  %v236_v5 = vsel %vm234_vm0, %v220_v1, -inf }
  0x3e   : > { %v237_v6 = vsel %vm234_vm0, %v221_v2, -inf  ;;  %v238_v7 = vsel %vm234_vm0, %v222_v3, -inf  ;;  %v239_v8 = vmax.f32 %v235_v4, %v236_v5  ;;  %v225_v22 = vshrl.u32 %v224_v19, 7  ;;  %v223_v35 = vld [vmem:[%s931_s27] sm:$0x3]  ;;  %s564_s21 = smul.u32 12, %s921_s25 }
  0x3f   : > { %v240_v9 = vmax.f32 %v237_v6, %v238_v7  ;;  %v227_v30 = vand.u32 127, %v224_v19  ;;  %vm272_vm2 = vcmp.eq.s32.totalorder %v223_v35, 0  ;;  %vm273_vm3 = vcmp.eq.s32.totalorder %v223_v35, 1  ;;  %s565_s29 = smul.u32 192, %s780_s12  ;;  %s417_s12 = scalar_lea.sflag [#allocation4], %s921_s25 }
  0x40   : > { %v231_v31 = vmul.u32 128, %v225_v22  ;;  %vm274_vm4 = vcmp.eq.s32.totalorder %v223_v35, 2  ;;  %vm275_vm5 = vcmp.eq.s32.totalorder %v223_v35, 3  ;;  %v794_v37 = vmov 0.0   ;;  %s1003_s28 = scalar_lea.vmem [#allocation7], %s564_s21  ;;  %s795_s30 = smov [#allocation7]  }
  0x41   : > { %v241_v10 = vmax.f32 %v239_v8, %v240_v9  ;;  %vm324_vm10 = vcmask 1041409   ;;  %vm326_vm11 = vcmask 1042434   ;;  %vm328_vm12 = vcmask 1043459   ;;  %s432_s3 = sshll.u32 %s1003_s28, 4  ;;  %s1022_s15 = scalar_lea.hbm %s1074_s2, %s565_s29  ;;  %s1016_s3 = int_to_ptr.vmem [resolvable:$true] %s432_s3 }
  0x42   : > { %v232_v34 = vadd.s32 %v231_v31, %v227_v30  ;;  %s704_s16 = scalar_lea.vmem %s1016_s3, 192  ;;  %s708_s4 = sshll.u32 %s795_s30, 4  ;;  %s709_s4 = int_to_ptr.vmem [resolvable:$false] %s708_s4 }
  0x43   : > { %v242_v11 = vsub.f32 %v219_v0, %v241_v10  ;;  %v243_v12 = vsub.f32 %v220_v1, %v241_v10  ;;  %v244_v13 = vsub.f32 %v221_v2, %v241_v10  ;;  %v245_v14 = vsub.f32 %v222_v3, %v241_v10  ;;  %p705_p8 = scmp.ne.s32.totalorder %s1016_s3, %s704_s16  ;;  %s710_s6 = scalar_lea.vmem %s709_s4, 384 }
  0x44   : > { %vm233_vm1 = vcmp.lt.s32.totalorder %v232_v34, 256  ;;  %p711_p5 = scmp.lt.s32.totalorder %s1016_s3, %s709_s4  ;;  %p712_p6 = scmp.lt.s32.totalorder %s710_s6, %s704_s16 }
  0x45   : > { %v246_v15 = vmul.f32 1.442695, %v242_v11  ;;  %v248_v16 = vmul.f32 1.442695, %v243_v12  ;;  %v250_v17 = vmul.f32 1.442695, %v244_v13  ;;  %vm276_vm6 = vmand %vm272_vm2, %vm233_vm1  ;;  %p706_p0 = pnand %p705_p8, %p864_p9 }
  0x46   : > { %v252_v18 = vmul.f32 1.442695, %v245_v14  ;;  %vm277_vm7 = vmand %vm273_vm3, %vm233_vm1  ;;  %v950_v38 = vsel %vm276_vm6, 1.0, %v794_v37  ;;  %p713_p4 = por %p712_p6, %p711_p5 }
  0x47   : > { %638 = vpow2.f32 %v246_v15  ;;  %vm278_vm8 = vmand %vm274_vm4, %vm233_vm1  ;;  %v952_v39 = vsel %vm277_vm7, 1.0, %v794_v37  ;;  %p707_p2 = pneg %p706_p0 }
  0x48   : > { %640 = vpow2.f32 %v248_v16  ;;  %vm279_vm9 = vmand %vm275_vm5, %vm233_vm1  ;;  %v954_v40 = vsel %vm278_vm8, 1.0, %v794_v37 }
  0x49   : > { %642 = vpow2.f32 %v250_v17  ;;  %v956_v41 = vsel %vm279_vm9, 1.0, %v794_v37  ;;  %p714_p7 = pnand %p713_p4, %p707_p2 }
  0x4a   : > { %644 = vpow2.f32 %v252_v18 }
  0x54   : > { %v639_v20 = vpop.eup %638 }
  0x55   : > { %v641_v21 = vpop.eup %640  ;;  %v254_v23 = vsel %vm234_vm0, %v639_v20, 0.0 }
  0x56   : > { %v643_v24 = vpop.eup %642  ;;  %v255_v25 = vsel %vm234_vm0, %v641_v21, 0.0 }
  0x57   : > { %v645_v26 = vpop.eup %644  ;;  %v256_v27 = vadd.f32 %v255_v25, %v254_v23  ;;  %v257_v28 = vsel %vm234_vm0, %v643_v24, 0.0 }
  0x58   : > { %v259_v29 = vsel %vm234_vm0, %v645_v26, 0.0 }
  0x59   : > { %v258_v32 = vadd.f32 %v257_v28, %v256_v27 }
  0x5b   : > { %v260_v33 = vadd.f32 %v259_v29, %v258_v32 }
  0x5d   : > { %646 = vrcp.f32 %v260_v33 }
  0x6a   : > { %v647_v36 = vpop.eup %646 }
  0x6b   : > { %v262_v42 = vmul.f32 %v647_v36, %v639_v20  ;;  %v263_v43 = vmul.f32 %v647_v36, %v641_v21  ;;  %v264_v44 = vmul.f32 %v647_v36, %v643_v24  ;;  %v265_v45 = vmul.f32 %v647_v36, %v645_v26 }
  0x6d   : > { %v268_v46 = vsel %vm233_vm1, %v262_v42, 0.0  ;;  %v269_v47 = vsel %vm233_vm1, %v263_v43, 0.0  ;;  %v270_v48 = vsel %vm233_vm1, %v264_v44, 0.0  ;;  %v271_v49 = vsel %vm233_vm1, %v265_v45, 0.0 }
  0x6e   : > { %v963_v50 = vmul.f32 %v950_v38, %v268_v46  ;;  %v966_v51 = vmul.f32 %v952_v39, %v269_v47  ;;  %v969_v52 = vmul.f32 %v954_v40, %v270_v48  ;;  %v972_v53 = vmul.f32 %v956_v41, %v271_v49 }
  0x70   : > { %v292_v54 = vsel %vm234_vm0, %v963_v50, 0.0  ;;  %v299_v55 = vsel %vm234_vm0, %v966_v51, 0.0  ;;  %v306_v56 = vsel %vm234_vm0, %v969_v52, 0.0  ;;  %v313_v57 = vsel %vm234_vm0, %v972_v53, 0.0 }
  0x71   : > { %v293_v58 = vrot.slane %v292_v54, 4  ;;  %v300_v59 = vrot.slane %v299_v55, 4  ;;  %v307_v60 = vrot.slane %v306_v56, 4  ;;  %v314_v61 = vrot.slane %v313_v57, 4 }
  0x72   : > { %v332_v62 = vsub.f32 %v268_v46, %v963_v50  ;;  %v333_v63 = vsub.f32 %v269_v47, %v966_v51  ;;  %v334_v0 = vsub.f32 %v270_v48, %v969_v52  ;;  %v335_v1 = vsub.f32 %v271_v49, %v972_v53 }
  0x73   : > { %v294_v2 = vadd.f32 %v293_v58, %v292_v54  ;;  %v301_v3 = vadd.f32 %v300_v59, %v299_v55  ;;  %v308_v4 = vadd.f32 %v307_v60, %v306_v56  ;;  %v315_v5 = vadd.f32 %v314_v61, %v313_v57 }
  0x74   : > { %v336_v6 = vsel %vm234_vm0, %v332_v62, 0.0  ;;  %v343_v7 = vsel %vm234_vm0, %v333_v63, 0.0  ;;  %v350_v8 = vsel %vm234_vm0, %v334_v0, 0.0  ;;  %v357_v9 = vsel %vm234_vm0, %v335_v1, 0.0 }
  0x75   : > { %v295_v10 = vrot.slane %v294_v2, 2  ;;  %v302_v11 = vrot.slane %v301_v3, 2  ;;  %v309_v12 = vrot.slane %v308_v4, 2  ;;  %v316_v13 = vrot.slane %v315_v5, 2 }
  0x76   : > { %v337_v14 = vrot.slane %v336_v6, 4  ;;  %v344_v15 = vrot.slane %v343_v7, 4  ;;  %v351_v16 = vrot.slane %v350_v8, 4  ;;  %v358_v17 = vrot.slane %v357_v9, 4 }
  0x77   : > { %v296_v18 = vadd.f32 %v295_v10, %v294_v2  ;;  %v303_v19 = vadd.f32 %v302_v11, %v301_v3  ;;  %v310_v20 = vadd.f32 %v309_v12, %v308_v4  ;;  %v317_v21 = vadd.f32 %v316_v13, %v315_v5 }
  0x78   : > { %v338_v22 = vadd.f32 %v337_v14, %v336_v6  ;;  %v345_v23 = vadd.f32 %v344_v15, %v343_v7  ;;  %v352_v24 = vadd.f32 %v351_v16, %v350_v8  ;;  %v359_v25 = vadd.f32 %v358_v17, %v357_v9 }
  0x79   : > { %v297_v26 = vrot.slane %v296_v18, 1  ;;  %v304_v27 = vrot.slane %v303_v19, 1  ;;  %v311_v28 = vrot.slane %v310_v20, 1  ;;  %v318_v29 = vrot.slane %v317_v21, 1 }
  0x7a   : > { %v339_v30 = vrot.slane %v338_v22, 2  ;;  %v346_v31 = vrot.slane %v345_v23, 2  ;;  %v353_v32 = vrot.slane %v352_v24, 2  ;;  %v360_v33 = vrot.slane %v359_v25, 2 }
  0x7b   : > { %v298_v34 = vadd.f32 %v297_v26, %v296_v18  ;;  %v305_v35 = vadd.f32 %v304_v27, %v303_v19  ;;  %v312_v36 = vadd.f32 %v311_v28, %v310_v20  ;;  %v319_v37 = vadd.f32 %v318_v29, %v317_v21 }
  0x7c   : > { %v340_v42 = vadd.f32 %v339_v30, %v338_v22  ;;  %v347_v43 = vadd.f32 %v346_v31, %v345_v23  ;;  %v354_v44 = vadd.f32 %v353_v32, %v352_v24  ;;  %v361_v45 = vadd.f32 %v360_v33, %v359_v25 }
  0x7d   : > { %v325_v46 = vsel %vm324_vm10, %v305_v35, %v298_v34  ;;  %v374_v47 = vsub.f32 %v950_v38, %v963_v50  ;;  %v375_v48 = vsub.f32 %v952_v39, %v966_v51  ;;  %v376_v49 = vsub.f32 %v954_v40, %v969_v52 }
  0x7e   : > { %v327_v54 = vsel %vm326_vm11, %v312_v36, %v325_v46  ;;  %v341_v55 = vrot.slane %v340_v42, 1  ;;  %v348_v56 = vrot.slane %v347_v43, 1  ;;  %v355_v57 = vrot.slane %v354_v44, 1 }
  0x7f   : > { %v329_v58 = vsel %vm328_vm12, %v319_v37, %v327_v54  ;;  %v362_v59 = vrot.slane %v361_v45, 1  ;;  %v377_v60 = vsub.f32 %v956_v41, %v972_v53  ;;  %v378_v61 = vsel %vm234_vm0, %v374_v47, 0.0 }
  0x80   : > { %331 = vst [vmem:[%s1003_s28] sm:$0xf] %v329_v58  ;;  %v342_v38 = vadd.f32 %v341_v55, %v340_v42  ;;  %v349_v39 = vadd.f32 %v348_v56, %v347_v43  ;;  %v356_v40 = vadd.f32 %v355_v57, %v354_v44  ;;  %v379_v50 = vrot.slane %v378_v61, 4 }
  0x81   : > { %v363_v51 = vadd.f32 %v362_v59, %v361_v45  ;;  %v385_v52 = vsel %vm234_vm0, %v375_v48, 0.0  ;;  %v392_v62 = vsel %vm234_vm0, %v376_v49, 0.0  ;;  %v399_v63 = vsel %vm234_vm0, %v377_v60, 0.0 }
  0x82   : > { %v368_v41 = vsel %vm324_vm10, %v349_v39, %v342_v38  ;;  %v380_v53 = vadd.f32 %v379_v50, %v378_v61  ;;  %v386_v0 = vrot.slane %v385_v52, 4  ;;  %v393_v1 = vrot.slane %v392_v62, 4 }
  0x83   : > { %v369_v2 = vsel %vm326_vm11, %v356_v40, %v368_v41  ;;  %v400_v3 = vrot.slane %v399_v63, 4 }
  0x84   : > { %v370_v4 = vsel %vm328_vm12, %v363_v51, %v369_v2  ;;  %v381_v5 = vrot.slane %v380_v53, 2  ;;  %v387_v6 = vadd.f32 %v386_v0, %v385_v52  ;;  %v394_v7 = vadd.f32 %v393_v1, %v392_v62 }
  0x85   : > { %558 = vst [vmem:[%s1003_s28 + $0x4] sm:$0xf] %v370_v4  ;;  %v401_v8 = vadd.f32 %v400_v3, %v399_v63 }
  0x86   : > { %v382_v9 = vadd.f32 %v381_v5, %v380_v53  ;;  %v388_v10 = vrot.slane %v387_v6, 2  ;;  %v395_v11 = vrot.slane %v394_v7, 2 }
  0x87   : > { %v402_v12 = vrot.slane %v401_v8, 2 }
  0x88   : > { %v383_v13 = vrot.slane %v382_v9, 1  ;;  %v389_v14 = vadd.f32 %v388_v10, %v387_v6  ;;  %v396_v15 = vadd.f32 %v395_v11, %v394_v7 }
  0x89   : > { %v403_v16 = vadd.f32 %v402_v12, %v401_v8 }
  0x8a   : > { %v384_v17 = vadd.f32 %v383_v13, %v382_v9  ;;  %v390_v18 = vrot.slane %v389_v14, 1  ;;  %v397_v19 = vrot.slane %v396_v15, 1 }
  0x8b   : > { %v404_v20 = vrot.slane %v403_v16, 1 }
  0x8c   : > { %v391_v21 = vadd.f32 %v390_v18, %v389_v14  ;;  %v398_v22 = vadd.f32 %v397_v19, %v396_v15 }
  0x8d   : > { %v405_v23 = vadd.f32 %v404_v20, %v403_v16 }
  0x8e   : > { %v410_v24 = vsel %vm324_vm10, %v391_v21, %v384_v17 }
  0x8f   : > { %v411_v25 = vsel %vm326_vm11, %v398_v22, %v410_v24 }
  0x90   : > { %v412_v26 = vsel %vm328_vm12, %v405_v23, %v411_v25 }
  0x91   : > { %559 = vst [vmem:[%s1003_s28 + $0x8] sm:$0xf] %v412_v26 }
  0x92   : > { %717 = shalt.err (!%p714_p7)
}
  0x93   : > { %s718_s18 = scalar_lea.hbm %s1022_s15, 192  ;;  %s722_s5 = scalar_lea.hbm %s1074_s2, 384 }
  0x94   : > { %p719_p1 = scmp.ne.s32.totalorder %s1022_s15, %s718_s18  ;;  %p723_p3 = scmp.lt.s32.totalorder %s1022_s15, %s1074_s2 }
  0x95   : > { %p724_p8 = scmp.lt.s32.totalorder %s722_s5, %s718_s18 }
  0x96   : > { %p720_p10 = pnand %p719_p1, %p864_p9 }
  0x97   : > { %p725_p0 = por %p724_p8, %p723_p3 }
  0x98   : > { %p721_p13 = pneg %p720_p10 }
  0x9a   : > { %p726_p2 = pnand %p725_p0, %p721_p13 }
  0x9c   : > { %729 = shalt.err (!%p726_p2)
}
  0x9d   : > { %s796_s21 = smov 64   ;;  %s797_s28 = smov 4  }
  0x9e   : > { %570 = dma.vmem_to_hbm [thread:$0]  (%p864_p9), %s1016_s3, 192, %s1022_s15, %s417_s12, %s796_s21, %s796_s21, %s797_s28  }
  0x9f PF: > { %s447_s29 = sand.u32 1, %s768_s9   ;;  %p580_p5 = pnand %p545_p12, %p871_p11 }
  0xa0   : > { %s448_s7 = scalar_lea.sflag [#allocation4], %s447_s29 }
  0xa1   : > { %p581_p6 = pneg %p580_p5 }
  0xa3   : > { %763 = dma.done.wait (%p581_p6), %s448_s7, 192  }
  0xa4   : > { %765 = vsyncadd (%p581_p6), %s448_s7, 4294967104  ;;  %s21_s14 = sadd.s32 1, %s788_s14   ;;  %s1081_s9 = smov %s772_s10 }
  0xa5   : > { %p18_p4 = scmp.ge.s32.totalorder %s21_s14, 4   ;;  %s1082_s10 = smov %s776_s11 }
  0xa6   : > { %s1083_s11 = smov %s869_s23  ;;  %s1084_s12 = smov %s784_s13 }
  0xa7   : > { %s1085_s13 = smov %s1087_s17  ;;  %20 = sbr.rel (!%p18_p4) target bundleno = 8 (0x8), region = 88 }
  0xac   :  { %453 = vsyncpa [#allocation3], 1 }
  0xad   :  { %455 = vsyncpa [#allocation3 + $0x1], 1 }
  0xae   :  { %456 = vsyncpa [#allocation6], 1 }
  0xaf   :  { %458 = vsyncpa [#allocation6 + $0x1], 1 }
  0xb0   :  { %459 = vsyncpa [#allocation4], 1 }
  0xb1   :  { %461 = vsyncpa [#allocation4 + $0x1], 1 }

</bundles_post_ra>
